<compile_context>
chip_gen: v5e
topology: v5e:2x2
jax: 0.10.0
libtpu: 0.0.40
codegen_flags: <defaults>
</compile_context>

<pallas_src>
import functools

import jax
import jax.numpy as jnp
from jax.experimental import pallas as pl
from jax.experimental.pallas import tpu as pltpu


def _rational_hat_kernel(r_ref, x_ref, mu_ref, out_ref, *, p):
    # r_ref  : (1, 1)       SMEM, holds |r| (precomputed in the wrapper)
    # x_ref  : (2, TN)      VMEM tile of points: row 0 = x coords, row 1 = y coords
    # mu_ref : (L_pad, 2)   VMEM, centers: column 0 = x, column 1 = y (sublane-padded)
    # out_ref: (L_pad, TN)  output tile: centers on sublanes, points on lanes
    x = x_ref[...]
    mu = mu_ref[...]

    # (L_pad, 1) - (1, TN) -> (L_pad, TN); x rows broadcast over sublanes (cheap).
    dx = mu[:, 0:1] - x[0:1, :]
    dy = mu[:, 1:2] - x[1:2, :]

    if p == 1:
        norms = jnp.abs(dx) + jnp.abs(dy)               # no EUP work at all
    elif p == 2:
        norms = jnp.sqrt(dx * dx + dy * dy)             # single EUP sqrt
    else:
        pi = int(p)
        if pi == p and pi > 0 and pi % 2 == 0:
            s = dx ** pi + dy ** pi                     # lax.integer_pow: VPU multiplies
        else:
            s = jnp.abs(dx) ** p + jnp.abs(dy) ** p     # generic fallback (exp/log pow)
        norms = s ** (1.0 / p)

    r_abs = r_ref[0, 0]
    a = jnp.abs(r_abs - norms)
    # 1/(1+n) - 1/(1+a)  ==  (a - n) / ((1+n)*(1+a))   (one exact divide, not two)
    out_ref[...] = ((a - norms) / ((1.0 + norms) * (1.0 + a))).astype(out_ref.dtype)


def _pick_tile(n):
    """Point-tile width (lane axis). Always a multiple of 128.

    Small inputs get a single tile; larger inputs get a tile <= 4096 chosen so
    the grid has >= 2 steps (lets the parallel axis shard across v7x's 2 TCs).
    VMEM at tn=4096, l_pad=32 is ~0.5 MiB per output buffer — far below the
    scoped limit on v5e/v6e/v7x.
    """
    n128 = max(128, pl.cdiv(n, 128) * 128)
    if n128 <= 2048:
        return n128
    return min(4096, pl.cdiv(n128 // 2, 128) * 128)


@functools.partial(jax.jit, static_argnames=("p", "tn"))
def _rational_hat_fused(xs, mu, r, *, p, tn):
    """xs: tuple of (N_b, 2) f32 arrays. Returns tuple of (N_b, lnum) arrays."""
    lnum = mu.shape[-1]
    l_pad = max(8, pl.cdiv(lnum, 8) * 8)                 # 25 -> 32 sublanes
    lengths = [int(x.shape[0]) for x in xs]
    n = sum(lengths)
    n_pad = max(tn, pl.cdiv(n, tn) * tn)

    # Centers as (l_pad, 2): sublane-padded with zero rows (sliced off below).
    mu_t = jnp.pad(mu.reshape(2, lnum).astype(jnp.float32).T,
                   ((0, l_pad - lnum), (0, 0)))
    r_abs = jnp.abs(r.astype(jnp.float32).reshape(1, 1))

    # Concatenate the whole batch along the point axis, pad once, transpose so
    # points are lane-dense: (2, n_pad).
    x_all = jnp.concatenate([x.astype(jnp.float32).reshape(-1, 2) for x in xs],
                            axis=0)
    x_all = jnp.pad(x_all, ((0, n_pad - n), (0, 0))).T

    kernel = functools.partial(_rational_hat_kernel, p=p)
    out_pad = pl.pallas_call(
        kernel,
        out_shape=jax.ShapeDtypeStruct((l_pad, n_pad), jnp.float32),
        grid=(n_pad // tn,),
        in_specs=[
            pl.BlockSpec(memory_space=pltpu.MemorySpace.SMEM),   # |r| scalar
            pl.BlockSpec((2, tn), lambda i: (0, i)),             # point lane-tile
            pl.BlockSpec((l_pad, 2), lambda i: (0, 0)),          # resident mu
        ],
        out_specs=pl.BlockSpec((l_pad, tn), lambda i: (0, i)),
        compiler_params=pltpu.CompilerParams(
            dimension_semantics=("parallel",)),
    )(r_abs, x_all, mu_t)

    # Drop padded centers/points, flip back to the (points, lnum) orientation.
    out = out_pad[:lnum, :n].T                                    # (n, lnum)

    outs, off = [], 0
    for ln in lengths:
        outs.append(out[off:off + ln])
        off += ln
    return tuple(outs)


def rational_hat_layer(pd_points, mu, r, *, p=2, tn=None):
    """pd_points: list of (N_b, 2) arrays; mu: (1, 2, lnum); r: (1, 1).

    Returns a list of (N_b, lnum) arrays (same semantics as the PyTorch module),
    computed with a single fused, jitted pallas_call over the concatenated batch.
    """
    if not pd_points:
        return []
    n = sum(int(x.shape[0]) for x in pd_points)
    if tn is None:
        tn = _pick_tile(n)
    xs = tuple(jnp.asarray(x, jnp.float32).reshape(-1, 2) for x in pd_points)
    outs = _rational_hat_fused(xs, jnp.asarray(mu, jnp.float32),
                               jnp.asarray(r, jnp.float32), p=p, tn=tn)
    return list(outs)


def _reference(pd_points, mu, r, p=2):
    mu2 = jnp.asarray(mu, jnp.float32).reshape(1, 2, mu.shape[-1])
    r_abs = jnp.abs(jnp.asarray(r, jnp.float32)[0, 0])
    outs = []
    for x in pd_points:
        inp = jnp.asarray(x, jnp.float32)[:, :, None]              # (N, 2, 1)
        diff = inp - mu2                                           # (N, 2, L)
        norms = jnp.sum(jnp.abs(diff) ** p, axis=1) ** (1.0 / p)   # (N, L)
        outs.append(1.0 / (1.0 + norms) - 1.0 / (1.0 + jnp.abs(r_abs - norms)))
    return outs


if __name__ == "__main__":
    key = jax.random.PRNGKey(0)
    k_mu, k_r, k0, k1, k2, k3, k4 = jax.random.split(key, 7)

    lnum = 25
    # Deterministic "torch.rand"-style init (uniform [0,1)).
    mu = jax.random.uniform(k_mu, (1, 2, lnum), dtype=jnp.float32)
    r = jax.random.uniform(k_r, (1, 1), dtype=jnp.float32)

    # Small batch of 3 persistence diagrams with different point counts.
    pd_small = [
        jax.random.uniform(k0, (17, 2), dtype=jnp.float32),
        jax.random.uniform(k1, (40, 2), dtype=jnp.float32),
        jax.random.uniform(k2, (8, 2), dtype=jnp.float32),
    ]
    # Larger batch: exercises a multi-tile (grid >= 2) path.
    pd_big = [
        jax.random.uniform(k3, (1500, 2), dtype=jnp.float32),
        jax.random.uniform(k4, (1700, 2), dtype=jnp.float32),
    ]

    for name, batch, p in (("small_p2", pd_small, 2),
                           ("small_p1", pd_small, 1),
                           ("big_p2", pd_big, 2)):
        outs = rational_hat_layer(batch, mu, r, p=p)
        outs = [jax.block_until_ready(o) for o in outs]
        refs = _reference(batch, mu, r, p=p)
        for o, ref, x in zip(outs, refs, batch):
            assert o.shape == (x.shape[0], lnum), (name, o.shape)
            assert jnp.allclose(o, ref, rtol=1e-5, atol=1e-5), f"mismatch: {name}"

    print("KERNEL_OK")
</pallas_src>

<mosaic_0001>
module attributes {stable_mosaic.version = 11 : i64} {
  func.func @_rational_hat_kernel(%arg0: i32, %arg1: memref<1x1xf32, #tpu.memory_space<smem>>, %arg2: memref<2x128xf32, #tpu.memory_space<vmem>>, %arg3: memref<32x2xf32, #tpu.memory_space<vmem>>, %arg4: memref<32x128xf32, #tpu.memory_space<vmem>>) attributes {dimension_semantics = [#tpu.dimension_semantics<parallel>], iteration_bounds = array<i64: 1>, scalar_prefetch = 0 : i64, scratch_operands = 0 : i64, tpu.core_type = #tpu.core_type<tc>, window_params = [{transform_indices = @transform_0, window_bounds = array<i64: 1, 1>}, {transform_indices = @transform_1, window_bounds = array<i64: 2, 128>}, {pipeline_mode = #tpu.pipeline_mode<synchronous>, transform_indices = @transform_2, window_bounds = array<i64: 32, 2>}, {transform_indices = @transform_3, window_bounds = array<i64: 32, 128>}]} {
    %c0 = arith.constant 0 : index
    %c0_0 = arith.constant 0 : index
    %0 = vector.load %arg2[%c0, %c0_0] : memref<2x128xf32, #tpu.memory_space<vmem>>, vector<2x128xf32>
    %c0_1 = arith.constant 0 : index
    %c0_2 = arith.constant 0 : index
    %1 = vector.load %arg3[%c0_1, %c0_2] : memref<32x2xf32, #tpu.memory_space<vmem>>, vector<32x2xf32>
    %2 = vector.extract_strided_slice %1 {offsets = [0, 0], sizes = [32, 1], strides = [1, 1]} : vector<32x2xf32> to vector<32x1xf32>
    %3 = vector.extract_strided_slice %0 {offsets = [0, 0], sizes = [1, 128], strides = [1, 1]} : vector<2x128xf32> to vector<1x128xf32>
    %4 = vector.broadcast %2 : vector<32x1xf32> to vector<32x128xf32>
    %5 = vector.broadcast %3 : vector<1x128xf32> to vector<32x128xf32>
    %6 = arith.subf %4, %5 : vector<32x128xf32>
    %7 = vector.extract_strided_slice %1 {offsets = [0, 1], sizes = [32, 1], strides = [1, 1]} : vector<32x2xf32> to vector<32x1xf32>
    %8 = vector.extract_strided_slice %0 {offsets = [1, 0], sizes = [1, 128], strides = [1, 1]} : vector<2x128xf32> to vector<1x128xf32>
    %9 = vector.broadcast %7 : vector<32x1xf32> to vector<32x128xf32>
    %10 = vector.broadcast %8 : vector<1x128xf32> to vector<32x128xf32>
    %11 = arith.subf %9, %10 : vector<32x128xf32>
    %12 = arith.mulf %6, %6 : vector<32x128xf32>
    %13 = arith.mulf %11, %11 : vector<32x128xf32>
    %14 = arith.addf %12, %13 : vector<32x128xf32>
    %15 = math.sqrt %14 : vector<32x128xf32>
    %c0_3 = arith.constant 0 : index
    %c0_4 = arith.constant 0 : index
    %16 = memref.load %arg1[%c0_3, %c0_4] : memref<1x1xf32, #tpu.memory_space<smem>>
    %17 = vector.broadcast %16 : f32 to vector<32x128xf32>
    %18 = arith.subf %17, %15 : vector<32x128xf32>
    %19 = math.absf %18 : vector<32x128xf32>
    %20 = arith.subf %19, %15 : vector<32x128xf32>
    %cst = arith.constant 1.000000e+00 : f32
    %21 = vector.broadcast %cst : f32 to vector<32x128xf32>
    %22 = arith.addf %21, %15 : vector<32x128xf32>
    %cst_5 = arith.constant 1.000000e+00 : f32
    %23 = vector.broadcast %cst_5 : f32 to vector<32x128xf32>
    %24 = arith.addf %23, %19 : vector<32x128xf32>
    %25 = arith.mulf %22, %24 : vector<32x128xf32>
    %26 = arith.divf %20, %25 : vector<32x128xf32>
    %c0_6 = arith.constant 0 : index
    %c0_7 = arith.constant 0 : index
    %27 = vector.load %arg4[%c0_6, %c0_7] : memref<32x128xf32, #tpu.memory_space<vmem>>, vector<32x128xf32>
    tpu.vector_store %arg4[%c0_6, %c0_7], %26 {strides = array<i32>} : memref<32x128xf32, #tpu.memory_space<vmem>>, vector<32x128xf32>,
    return
  }
  func.func @transform_0(%arg0: i32) -> (i32, i32) {
    %c0_i32 = arith.constant 0 : i32
    %c0_i32_0 = arith.constant 0 : i32
    %c0_i32_1 = arith.constant 0 : i32
    return %c0_i32, %c0_i32_0 : i32, i32
  }
  func.func @transform_1(%arg0: i32) -> (i32, i32) {
    %c0_i32 = arith.constant 0 : i32
    %c0_i32_0 = arith.constant 0 : i32
    return %c0_i32, %arg0 : i32, i32
  }
  func.func @transform_2(%arg0: i32) -> (i32, i32) {
    %c0_i32 = arith.constant 0 : i32
    %c0_i32_0 = arith.constant 0 : i32
    %c0_i32_1 = arith.constant 0 : i32
    return %c0_i32, %c0_i32_0 : i32, i32
  }
  func.func @transform_3(%arg0: i32) -> (i32, i32) {
    %c0_i32 = arith.constant 0 : i32
    %c0_i32_0 = arith.constant 0 : i32
    return %c0_i32, %arg0 : i32, i32
  }
}

</mosaic_0001>

<bundles_post_ra>
// kernel: _rational_hat_fused.1
= control target key start
LH: loop header
LB: loop body
LE: loop exit
PB: predicated region body
PF: predicated region fallthrough
CT: control target
= control target key end

     0   :  { %v243_v0 = vmov 0   ;;  %v244_v3 = vmov 1   ;;  %s346_s2 = inlined_call_operand.vmem [shape: f32[32,2], index: 2, kind: input, shape index: {}]   ;;  %s347_s1 = inlined_call_operand.vmem [shape: f32[2,128], index: 1, kind: input, shape index: {}]   ;;  %s348_s0 = inlined_call_operand.<no memory space> [shape: f32[1,1], index: 0, kind: input, shape index: {}]   ;;  %s349_s3 = inlined_call_operand.vmem [shape: f32[32,128], index: 3, kind: output, shape index: {}]  }
   0x1   :  { %223 = vset.pattern.permute.xlu1 %v243_v0  ;;  %222 = vset.pattern.permute.xlu0 %v243_v0  ;;  %v18_v1 = vld [vmem:[%s346_s2 + $0x10] sm:$0xff]  ;;  %v16_v2 = vld [vmem:[%s346_s2] sm:$0xff]  ;;  %v19_v4 = vld [vmem:[%s346_s2 + $0x18] sm:$0xff]  ;;  %v285_v48 = vstv %s348_s0 }
   0x2   :  { %32 = vperm.xlu1 %223, %v18_v1   ;;  %22 = vperm.xlu0 %222, %v16_v2   ;;  %v17_v5 = vld [vmem:[%s346_s2 + $0x8] sm:$0xff]  ;;  %v15_v6 = vld [vmem:[%s347_s1] sm:$0x3] }
   0x3   :  { %224 = vset.pattern.permute.xlu2 %v244_v3  ;;  %v61_v8 = vperm.slane %v15_v6, 1  ;;  %v40_v9 = vperm.slane %v15_v6, 0 }
   0x4   :  { %46 = vperm.xlu2 %224, %v16_v2  }
   0xa   :  { %37 = vperm.xlu1 %223, %v19_v4   ;;  %27 = vperm.xlu0 %222, %v17_v5  }
   0xc   :  { %50 = vperm.xlu2 %224, %v17_v5  }
  0x12   :  { %226 = vset.pattern.permute.xlu1 %v244_v3  ;;  %225 = vset.pattern.permute.xlu0 %v244_v3 }
  0x13   :  { %58 = vperm.xlu1 %226, %v19_v4   ;;  %54 = vperm.xlu0 %225, %v18_v1  }
  0x5e   :  { %v47_v7 = vpop.permute.xlu2 %46 }
  0x5f   :  { %v62_v10 = vsub.f32 %v47_v7, %v61_v8 }
  0x61   :  { %v70_v13 = vmul.f32 %v62_v10, %v62_v10 }
  0x66   :  { %v51_v15 = vpop.permute.xlu2 %50 }
  0x67   :  { %v63_v18 = vsub.f32 %v51_v15, %v61_v8 }
  0x69   :  { %v71_v21 = vmul.f32 %v63_v18, %v63_v18 }
  0x74   :  { %v33_v11 = vpop.permute.xlu1 %32  ;;  %v23_v12 = vpop.permute.xlu0 %22 }
  0x75   :  { %v41_v14 = vsub.f32 %v23_v12, %v40_v9  ;;  %v43_v27 = vsub.f32 %v33_v11, %v40_v9 }
  0x77   :  { %v66_v16 = vmul.f32 %v41_v14, %v41_v14  ;;  %v68_v35 = vmul.f32 %v43_v27, %v43_v27 }
  0x79   :  { %v74_v17 = vadd.f32 %v70_v13, %v66_v16 }
  0x7b   :  { %227 = vrsqrt.f32 %v74_v17  ;;  %vm85_vm0 = vcmp.eq.f32.partialorder %v74_v17, inf  ;;  %v88_v47 = vand.u32 2147483648, %v74_v17  ;;  %vm87_vm1 = vcmp.eq.f32.partialorder %v74_v17, 0.0 }
  0x7c   :  { %v38_v19 = vpop.permute.xlu1 %37  ;;  %v28_v20 = vpop.permute.xlu0 %27 }
  0x7d   :  { %v42_v22 = vsub.f32 %v28_v20, %v40_v9  ;;  %v44_v29 = vsub.f32 %v38_v19, %v40_v9 }
  0x7f   :  { %v67_v23 = vmul.f32 %v42_v22, %v42_v22  ;;  %v69_v37 = vmul.f32 %v44_v29, %v44_v29 }
  0x81   :  { %v228_v24 = vpop.eup %227  ;;  %v75_v25 = vadd.f32 %v71_v21, %v67_v23 }
  0x82   :  { %v79_v26 = vmul.f32 %v228_v24, %v74_v17 }
  0x83   :  { %229 = vrsqrt.f32 %v75_v25  ;;  %vm97_vm2 = vcmp.eq.f32.partialorder %v75_v25, inf  ;;  %v100_v63 = vand.u32 2147483648, %v75_v25  ;;  %vm99_vm3 = vcmp.eq.f32.partialorder %v75_v25, 0.0 }
  0x84   :  { %v80_v28 = vmul.f32 %v228_v24, %v79_v26 }
  0x85   :  { %v59_v30 = vpop.permute.xlu1 %58  ;;  %v55_v31 = vpop.permute.xlu0 %54 }
  0x86   :  { %v81_v32 = vmul.f32 0.5, %v80_v28  ;;  %v65_v33 = vsub.f32 %v59_v30, %v61_v8  ;;  %v64_v34 = vsub.f32 %v55_v31, %v61_v8 }
  0x88   :  { %v82_v36 = vsub.f32 1.5, %v81_v32  ;;  %v73_v38 = vmul.f32 %v65_v33, %v65_v33  ;;  %v72_v39 = vmul.f32 %v64_v34, %v64_v34 }
  0x89   :  { %v230_v40 = vpop.eup %229 }
  0x8a   :  { %v83_v41 = vmul.f32 %v228_v24, %v82_v36  ;;  %v91_v42 = vmul.f32 %v230_v40, %v75_v25  ;;  %v77_v43 = vadd.f32 %v73_v38, %v69_v37  ;;  %v280_v44 = vadd.f32 %v72_v39, %v68_v35 }
  0x8c   :  { %v84_v45 = vmul.f32 %v83_v41, %v74_v17  ;;  %v92_v46 = vmul.f32 %v230_v40, %v91_v42  ;;  %231 = vrsqrt.f32 %v77_v43  ;;  %vm121_vm4 = vcmp.eq.f32.partialorder %v77_v43, inf }
  0x8d   :  { %233 = vrsqrt.f32 %v280_v44  ;;  %vm123_vm5 = vcmp.eq.f32.partialorder %v77_v43, 0.0  ;;  %vm109_vm6 = vcmp.eq.f32.partialorder %v280_v44, inf  ;;  %v112_v24 = vand.u32 2147483648, %v280_v44 }
  0x8e   :  { %v86_v49 = vsel %vm85_vm0, %v74_v17, %v84_v45  ;;  %v93_v50 = vmul.f32 0.5, %v92_v46  ;;  %v124_v17 = vand.u32 2147483648, %v77_v43  ;;  %vm111_vm7 = vcmp.eq.f32.partialorder %v280_v44, 0.0 }
  0x8f   :  { %v288_v51 = vsel %vm87_vm1, %v88_v47, %v86_v49 }
  0x90   :  { %v128_v52 = vsub.f32 %v285_v48, %v288_v51  ;;  %v94_v53 = vsub.f32 1.5, %v93_v50  ;;  %v140_v59 = vadd.f32 1.0, %v288_v51 }
  0x92   :  { %v232_v54 = vpop.eup %231  ;;  %v292_v55 = vand.u32 2147483647, %v128_v52  ;;  %v95_v56 = vmul.f32 %v230_v40, %v94_v53 }
  0x93   :  { %v234_v57 = vpop.eup %233  ;;  %v115_v58 = vmul.f32 %v232_v54, %v77_v43 }
  0x94   :  { %v144_v60 = vadd.f32 1.0, %v292_v55  ;;  %v96_v61 = vmul.f32 %v95_v56, %v75_v25  ;;  %v103_v62 = vmul.f32 %v234_v57, %v280_v44  ;;  %v136_v39 = vsub.f32 %v292_v55, %v288_v51 }
  0x95   :  { %v116_v0 = vmul.f32 %v232_v54, %v115_v58 }
  0x96   :  { %v148_v1 = vmul.f32 %v144_v60, %v140_v59  ;;  %v98_v2 = vsel %vm97_vm2, %v75_v25, %v96_v61  ;;  %v104_v3 = vmul.f32 %v234_v57, %v103_v62 }
  0x97   :  { %v297_v4 = vsel %vm99_vm3, %v100_v63, %v98_v2  ;;  %v117_v5 = vmul.f32 0.5, %v116_v0 }
  0x98   :  { %235 = vrcp.f32 %v148_v1  ;;  %v129_v6 = vsub.f32 %v285_v48, %v297_v4  ;;  %v105_v8 = vmul.f32 0.5, %v104_v3  ;;  %v141_v12 = vadd.f32 1.0, %v297_v4 }
  0x99   :  { %v118_v7 = vsub.f32 1.5, %v117_v5  ;;  %v163_v25 = vand.u32 2147483648, %v148_v1  ;;  %v161_v29 = vand.u32 2147483647, %v148_v1  ;;  %vm157_vm9 = vweird.f32 %v148_v1 }
  0x9a   :  { %v301_v9 = vand.u32 2147483647, %v129_v6  ;;  %v106_v11 = vsub.f32 1.5, %v105_v8 }
  0x9b   :  { %v119_v10 = vmul.f32 %v232_v54, %v118_v7  ;;  %v164_v34 = vor.u32 1.1754944e-38, %v163_v25  ;;  %vm162_vm11 = vcmp.eq.f32.partialorder %v161_v29, 8.507059e+37 }
  0x9c   :  { %v145_v13 = vadd.f32 1.0, %v301_v9  ;;  %v107_v15 = vmul.f32 %v234_v57, %v106_v11  ;;  %v137_v55 = vsub.f32 %v301_v9, %v297_v4 }
  0x9d   :  { %v120_v14 = vmul.f32 %v119_v10, %v77_v43 }
  0x9e   :  { %v236_v16 = vpop.eup %235  ;;  %v149_v19 = vmul.f32 %v145_v13, %v141_v12  ;;  %v108_v22 = vmul.f32 %v107_v15, %v280_v44 }
  0x9f   :  { %v153_v18 = vmul.f32 %v236_v16, %v148_v1  ;;  %v122_v20 = vsel %vm121_vm4, %v77_v43, %v120_v14  ;;  %vm158_vm8 = vweird.f32 %v236_v16 }
  0xa0   :  { %v305_v21 = vsel %vm123_vm5, %v124_v17, %v122_v20  ;;  %237 = vrcp.f32 %v149_v19  ;;  %v110_v27 = vsel %vm109_vm6, %v280_v44, %v108_v22  ;;  %vm159_vm10 = vmor %vm157_vm9, %vm158_vm8  ;;  %v176_v51 = vand.u32 2147483647, %v149_v19 }
  0xa1   :  { %v154_v23 = vsub.f32 1.0, %v153_v18  ;;  %v131_v26 = vsub.f32 %v285_v48, %v305_v21  ;;  %v314_v30 = vsel %vm111_vm7, %v112_v24, %v110_v27  ;;  %v143_v35 = vadd.f32 1.0, %v305_v21 }
  0xa2   :  { %v130_v32 = vsub.f32 %v285_v48, %v314_v30  ;;  %v142_v45 = vadd.f32 1.0, %v314_v30  ;;  %v178_v48 = vand.u32 2147483648, %v149_v19  ;;  %vm172_vm13 = vweird.f32 %v149_v19 }
  0xa3   :  { %v155_v28 = vmul.f32 %v236_v16, %v154_v23  ;;  %v316_v31 = vand.u32 2147483647, %v131_v26  ;;  %vm177_vm15 = vcmp.eq.f32.partialorder %v176_v51, 8.507059e+37 }
  0xa4   :  { %v322_v37 = vand.u32 2147483647, %v130_v32  ;;  %v179_v53 = vor.u32 1.1754944e-38, %v178_v48 }
  0xa5   :  { %v156_v33 = vadd.f32 %v236_v16, %v155_v28  ;;  %v147_v36 = vadd.f32 1.0, %v316_v31  ;;  %v139_v8 = vsub.f32 %v316_v31, %v305_v21 }
  0xa6   :  { %v238_v38 = vpop.eup %237  ;;  %v146_v46 = vadd.f32 1.0, %v322_v37  ;;  %v138_v14 = vsub.f32 %v322_v37, %v314_v30 }
  0xa7   :  { %v160_v40 = vsel %vm159_vm10, %v236_v16, %v156_v33  ;;  %v168_v42 = vmul.f32 %v238_v38, %v149_v19  ;;  %v151_v43 = vmul.f32 %v147_v36, %v143_v35  ;;  %vm173_vm12 = vweird.f32 %v238_v38 }
  0xa8   :  { %v165_v41 = vsel %vm162_vm11, %v164_v34, %v160_v40  ;;  %v150_v49 = vmul.f32 %v146_v46, %v142_v45  ;;  %vm174_vm14 = vmor %vm172_vm13, %vm173_vm12 }
  0xa9   :  { %v166_v44 = vmul.f32 %v165_v41, %v136_v39  ;;  %v169_v47 = vsub.f32 1.0, %v168_v42  ;;  %239 = vrcp.f32 %v151_v43  ;;  %v208_v62 = vand.u32 2147483648, %v151_v43 }
  0xaa   :  { %241 = vrcp.f32 %v150_v49  ;;  %v206_v1 = vand.u32 2147483647, %v151_v43  ;;  %vm202_vm1 = vweird.f32 %v151_v43  ;;  %v193_v4 = vand.u32 2147483648, %v150_v49 }
  0xab   :  { %212 = vst [vmem:[%s349_s3] sm:$0xff] %v166_v44  ;;  %v170_v50 = vmul.f32 %v238_v38, %v169_v47  ;;  %v209_v5 = vor.u32 1.1754944e-38, %v208_v62  ;;  %v191_v7 = vand.u32 2147483647, %v150_v49  ;;  %vm187_vm5 = vweird.f32 %v150_v49 }
  0xac   :  { %vm207_vm4 = vcmp.eq.f32.partialorder %v206_v1, 8.507059e+37  ;;  %v194_v13 = vor.u32 1.1754944e-38, %v193_v4 }
  0xad   :  { %v171_v52 = vadd.f32 %v238_v38, %v170_v50  ;;  %vm192_vm7 = vcmp.eq.f32.partialorder %v191_v7, 8.507059e+37 }
  0xaf   :  { %v240_v54 = vpop.eup %239  ;;  %v175_v56 = vsel %vm174_vm14, %v238_v38, %v171_v52 }
  0xb0   :  { %v180_v57 = vsel %vm177_vm15, %v179_v53, %v175_v56  ;;  %v198_v58 = vmul.f32 %v240_v54, %v151_v43  ;;  %v242_v60 = vpop.eup %241  ;;  %vm203_vm0 = vweird.f32 %v240_v54 }
  0xb1   :  { %v181_v59 = vmul.f32 %v180_v57, %v137_v55  ;;  %v183_v63 = vmul.f32 %v242_v60, %v150_v49  ;;  %vm204_vm2 = vmor %vm202_vm1, %vm203_vm0  ;;  %vm188_vm3 = vweird.f32 %v242_v60 }
  0xb2   :  { %v199_v61 = vsub.f32 1.0, %v198_v58  ;;  %vm189_vm6 = vmor %vm187_vm5, %vm188_vm3 }
  0xb3   :  { %213 = vst [vmem:[%s349_s3 + $0x8] sm:$0xff] %v181_v59  ;;  %v184_v2 = vsub.f32 1.0, %v183_v63 }
  0xb4   :  { %v200_v0 = vmul.f32 %v240_v54, %v199_v61 }
  0xb5   :  { %v185_v6 = vmul.f32 %v242_v60, %v184_v2 }
  0xb6   :  { %v201_v3 = vadd.f32 %v240_v54, %v200_v0 }
  0xb7   :  { %v186_v11 = vadd.f32 %v242_v60, %v185_v6 }
  0xb8   :  { %v205_v9 = vsel %vm204_vm2, %v240_v54, %v201_v3 }
  0xb9   :  { %v210_v10 = vsel %vm207_vm4, %v209_v5, %v205_v9  ;;  %v190_v15 = vsel %vm189_vm6, %v242_v60, %v186_v11 }
  0xba   :  { %v211_v12 = vmul.f32 %v210_v10, %v139_v8  ;;  %v195_v16 = vsel %vm192_vm7, %v194_v13, %v190_v15 }
  0xbb   :  { %v196_v17 = vmul.f32 %v195_v16, %v138_v14 }
  0xbc   :  { %215 = vst [vmem:[%s349_s3 + $0x18] sm:$0xff] %v211_v12 }
  0xbd   :  { %214 = vst [vmem:[%s349_s3 + $0x10] sm:$0xff] %v196_v17 }

</bundles_post_ra>
